<compile_context>
chip_gen: v7x
topology: tpu7x:2x2x1
jax: 0.10.0
libtpu: 0.0.40
codegen_flags: <defaults>
</compile_context>

<pallas_src>
import functools
import math

import jax
import jax.numpy as jnp
from jax import lax
from jax.experimental import pallas as pl
from jax.experimental.pallas import tpu as pltpu


def _mha_kernel(x_ref, wqkv_ref, wo_ref, bo_ref, *rest, n_heads, head_dim,
                masked):
    """One grid step = one batch element.

    x_ref:    (1, S, E)   bf16 input block for batch b
    wqkv_ref: (E, 3E)     bf16 fused [Wq*scale | Wk | Wv]^T (grid-resident)
    wo_ref:   (E, E)      bf16 Wo^T (grid-resident)
    bo_ref:   (1, E)      f32 output-projection bias (grid-resident)
    bias_ref: (1, S, S)   bf16 additive attention bias (0 / -inf), masked only
    out_ref:  (1, S, E)   f32 output block for batch b
    """
    if masked:
        bias_ref, out_ref = rest
    else:
        (out_ref,) = rest

    E = n_heads * head_dim
    x = x_ref[0]                                                     # (S, E) bf16

    # Fused QKV projection: one wide MXU matmul, f32 accumulation.
    qkv = jnp.dot(x, wqkv_ref[...],
                  preferred_element_type=jnp.float32)                # (S, 3E) f32

    if masked:
        bias = bias_ref[0].astype(jnp.float32)                       # (S, S)

    ctx_heads = []
    for h in range(n_heads):                                         # static unroll
        lo = h * head_dim
        q = qkv[:, lo:lo + head_dim]                                 # scale folded in
        k = qkv[:, E + lo:E + lo + head_dim]
        v = qkv[:, 2 * E + lo:2 * E + lo + head_dim]

        # scores[s, t] = <q_s, k_t>   (scale already folded into Wq)
        s = lax.dot_general(q.astype(jnp.bfloat16), k.astype(jnp.bfloat16),
                            (((1,), (1,)), ((), ())),
                            preferred_element_type=jnp.float32)      # (S, S) f32
        if masked:
            # Matches masked_fill(mask==0, -inf): fully masked rows -> NaN,
            # exactly like the PyTorch reference.
            s = s + bias

        m = jnp.max(s, axis=-1, keepdims=True)
        p = jnp.exp(s - m)                                           # f32
        denom = jnp.sum(p, axis=-1, keepdims=True)                   # (S, 1) f32

        ctx_un = jnp.dot(p.astype(jnp.bfloat16), v.astype(jnp.bfloat16),
                         preferred_element_type=jnp.float32)         # (S, Dh)
        # Deferred normalisation: per-row reciprocal on the EUP slot.
        ctx_heads.append(ctx_un * pl.reciprocal(denom, approx=True))

    ctx = jnp.concatenate(ctx_heads, axis=-1)                        # (S, E) f32

    # Fused output projection on the concatenated context + bias.
    out = jnp.dot(ctx.astype(jnp.bfloat16), wo_ref[...],
                  preferred_element_type=jnp.float32) + bo_ref[...]  # (S, E)
    out_ref[...] = out[None].astype(out_ref.dtype)


def prepare_mha_params(wq, wk, wv, wo, bo, *, compute_dtype=jnp.bfloat16):
    """One-time weight prep (hoisted out of the per-call path).

    wq, wk, wv: (H, Dh, E) per-head nn.Linear weights, PyTorch (out, in) layout.
    wo:         (E, E) output nn.Linear weight, bo: (E,) bias.
    """
    H, Dh, E = wq.shape
    assert H * Dh == E
    scale = float(Dh) ** -0.5

    def per_head_t(w):
        # (H, Dh, E) -> (E, H*Dh): column h*Dh+d corresponds to head h, dim d.
        return jnp.transpose(w, (2, 0, 1)).reshape(E, H * Dh)

    wq_t = per_head_t(wq) * scale          # fold softmax scale into Q projection
    wk_t = per_head_t(wk)
    wv_t = per_head_t(wv)
    wqkv = jnp.concatenate([wq_t, wk_t, wv_t], axis=1).astype(compute_dtype)
    wo_t = wo.T.astype(compute_dtype)      # out = ctx @ Wo^T + bo
    bo_2d = bo.reshape(1, E).astype(jnp.float32)
    return dict(wqkv=wqkv, wo_t=wo_t, bo=bo_2d, n_heads=H, head_dim=Dh)


def multi_head_attention(x, params, mask=None, *, compute_dtype=jnp.bfloat16):
    """Forward pass of MultiHeadAttentionBlock (eval mode; dropout = identity).

    x:    (B, S, E) float32
    mask: optional, broadcastable to (B, S, S); zero entries are masked out.
    """
    B, S, E = x.shape
    H, Dh = params["n_heads"], params["head_dim"]
    assert H * Dh == E
    masked = mask is not None

    x_c = x.astype(compute_dtype)

    in_specs = [
        pl.BlockSpec((1, S, E), lambda b: (b, 0, 0)),      # x: per-batch block
        pl.BlockSpec((E, 3 * E), lambda b: (0, 0)),        # Wqkv: grid-resident
        pl.BlockSpec((E, E), lambda b: (0, 0)),            # Wo^T: grid-resident
        pl.BlockSpec((1, E), lambda b: (0, 0)),            # bo:   grid-resident
    ]
    args = [x_c, params["wqkv"], params["wo_t"], params["bo"]]

    if masked:
        mask_b = jnp.broadcast_to(mask, (B, S, S))
        # Additive bias (0 / -inf) in bf16: no in-kernel compare/select,
        # half the mask DMA bytes of f32.
        attn_bias = jnp.where(mask_b != 0, 0.0, -jnp.inf).astype(compute_dtype)
        in_specs.append(pl.BlockSpec((1, S, S), lambda b: (b, 0, 0)))
        args.append(attn_bias)

    kernel = functools.partial(_mha_kernel, n_heads=H, head_dim=Dh, masked=masked)

    flops = B * (8 * S * E * E + 4 * S * S * E)
    bytes_accessed = (B * S * E * 2 + B * S * E * 4                # x in, out
                      + E * 3 * E * 2 + E * E * 2 + E * 4)         # weights, bias
    if masked:
        bytes_accessed += B * S * S * 2
    cost = pl.CostEstimate(flops=int(flops),
                           transcendentals=int(B * H * (S * S + S)),
                           bytes_accessed=int(bytes_accessed))

    out = pl.pallas_call(
        kernel,
        out_shape=jax.ShapeDtypeStruct((B, S, E), jnp.float32),
        grid_spec=pltpu.PrefetchScalarGridSpec(
            num_scalar_prefetch=0,
            grid=(B,),
            in_specs=in_specs,
            out_specs=pl.BlockSpec((1, S, E), lambda b: (b, 0, 0)),
        ),
        compiler_params=pltpu.CompilerParams(
            dimension_semantics=("parallel",)),
        cost_estimate=cost,
    )(*args)

    # TODO(synk): nn.Dropout(0.1) is identity in eval mode; training-mode
    # dropout would need pltpu.prng_seed + pltpu.stateful_bernoulli in-kernel.
    return out


def _mha_reference(x, wq, wk, wv, wo, bo, mask=None):
    """Plain-JAX f32 reference mirroring the PyTorch module (eval mode)."""
    B, S, E = x.shape
    H, Dh, _ = wq.shape
    scale = float(Dh) ** -0.5
    outs = []
    for h in range(H):
        q = x @ wq[h].T
        k = x @ wk[h].T
        v = x @ wv[h].T
        scores = jnp.einsum("bsd,btd->bst", q, k) * scale
        if mask is not None:
            m = jnp.broadcast_to(mask, (B, S, S))
            scores = jnp.where(m == 0, -jnp.inf, scores)
        attn = jax.nn.softmax(scores, axis=-1)
        outs.append(jnp.einsum("bst,btd->bsd", attn, v))
    ctx = jnp.concatenate(outs, axis=-1)
    return ctx @ wo.T + bo


if __name__ == "__main__":
    # Small deterministic setup: emb_size=32, n_heads=4 (head_dim=8), B=2, S=8.
    B, S, E, H = 2, 8, 32, 4
    Dh = E // H

    key = jax.random.PRNGKey(0)
    kx, kq, kk, kv, ko, kb = jax.random.split(key, 6)

    x = jax.random.normal(kx, (B, S, E), dtype=jnp.float32)
    w_scale = 1.0 / math.sqrt(E)
    wq = jax.random.normal(kq, (H, Dh, E), jnp.float32) * w_scale
    wk = jax.random.normal(kk, (H, Dh, E), jnp.float32) * w_scale
    wv = jax.random.normal(kv, (H, Dh, E), jnp.float32) * w_scale
    wo = jax.random.normal(ko, (E, E), jnp.float32) * w_scale
    bo = jax.random.normal(kb, (E,), jnp.float32) * 0.1

    # Weight prep happens once (transposes / fusion / bf16 cast hoisted here).
    params = prepare_mha_params(wq, wk, wv, wo, bo)

    # bf16 MXU inputs => expected quantisation error ~1e-2 vs the f32 reference.
    TOL = dict(atol=5e-2, rtol=5e-2)

    # Case 1: no mask (maskless kernel variant, no mask array materialised).
    out = jax.block_until_ready(multi_head_attention(x, params, mask=None))
    ref = _mha_reference(x, wq, wk, wv, wo, bo, mask=None)
    assert out.shape == (B, S, E)
    assert out.dtype == jnp.float32
    assert jnp.allclose(out, ref, **TOL), "MHA mismatch (no mask)"

    # Case 2: causal-style mask (every row keeps at least one position).
    causal = jnp.tril(jnp.ones((S, S), dtype=jnp.float32))[None]  # (1, S, S)
    out_m = jax.block_until_ready(multi_head_attention(x, params, mask=causal))
    ref_m = _mha_reference(x, wq, wk, wv, wo, bo, mask=causal)
    assert jnp.allclose(out_m, ref_m, **TOL), "MHA mismatch (mask)"

    print("KERNEL_OK")
</pallas_src>

<mosaic_0001>
module attributes {stable_mosaic.version = 11 : i64} {
  func.func @_mha_kernel(%arg0: i32, %arg1: memref<1x8x32xbf16, #tpu.memory_space<vmem>>, %arg2: memref<32x96xbf16, #tpu.memory_space<vmem>>, %arg3: memref<32x32xbf16, #tpu.memory_space<vmem>>, %arg4: memref<1x32xf32, #tpu.memory_space<vmem>>, %arg5: memref<1x8x32xf32, #tpu.memory_space<vmem>>) attributes {dimension_semantics = [#tpu.dimension_semantics<parallel>], iteration_bounds = array<i64: 2>, scalar_prefetch = 0 : i64, scratch_operands = 0 : i64, tpu.core_type = #tpu.core_type<tc>, window_params = [{transform_indices = @transform_0, window_bounds = array<i64: 1, 8, 32>}, {pipeline_mode = #tpu.pipeline_mode<synchronous>, transform_indices = @transform_1, window_bounds = array<i64: 32, 96>}, {pipeline_mode = #tpu.pipeline_mode<synchronous>, transform_indices = @transform_2, window_bounds = array<i64: 32, 32>}, {pipeline_mode = #tpu.pipeline_mode<synchronous>, transform_indices = @transform_3, window_bounds = array<i64: 1, 32>}, {transform_indices = @transform_4, window_bounds = array<i64: 1, 8, 32>}]} {
    %c0 = arith.constant 0 : index
    %c0_0 = arith.constant 0 : index
    %c0_1 = arith.constant 0 : index
    %0 = vector.load %arg1[%c0, %c0_0, %c0_1] : memref<1x8x32xbf16, #tpu.memory_space<vmem>>, vector<1x8x32xbf16>
    %1 = vector.shape_cast %0 : vector<1x8x32xbf16> to vector<8x32xbf16>
    %c0_2 = arith.constant 0 : index
    %c0_3 = arith.constant 0 : index
    %2 = vector.load %arg2[%c0_2, %c0_3] : memref<32x96xbf16, #tpu.memory_space<vmem>>, vector<32x96xbf16>
    %cst = arith.constant dense<0.000000e+00> : vector<8x96xf32>
    %3 = tpu.matmul %1, %2, %cst {dimension_numbers = #tpu.dot_dimension_numbers<[1], [0], [0], [1], [0, 0, 1, 1], [], []>} : vector<8x32xbf16>, vector<32x96xbf16>, vector<8x96xf32> -> vector<8x96xf32>
    %4 = vector.extract_strided_slice %3 {offsets = [0, 0], sizes = [8, 8], strides = [1, 1]} : vector<8x96xf32> to vector<8x8xf32>
    %5 = vector.extract_strided_slice %3 {offsets = [0, 32], sizes = [8, 8], strides = [1, 1]} : vector<8x96xf32> to vector<8x8xf32>
    %6 = vector.extract_strided_slice %3 {offsets = [0, 64], sizes = [8, 8], strides = [1, 1]} : vector<8x96xf32> to vector<8x8xf32>
    %7 = arith.truncf %4 : vector<8x8xf32> to vector<8x8xbf16>
    %8 = arith.truncf %5 : vector<8x8xf32> to vector<8x8xbf16>
    %cst_4 = arith.constant dense<0.000000e+00> : vector<8x8xf32>
    %9 = tpu.matmul %7, %8, %cst_4 {dimension_numbers = #tpu.dot_dimension_numbers<[1], [1], [0], [0], [0, 0, 1, 0], [], []>} : vector<8x8xbf16>, vector<8x8xbf16>, vector<8x8xf32> -> vector<8x8xf32>
    %cst_5 = arith.constant dense<0xFF800000> : vector<8xf32>
    %10 = vector.multi_reduction <maximumf>, %9, %cst_5 [1] : vector<8x8xf32> to vector<8xf32>
    %11 = vector.shape_cast %10 : vector<8xf32> to vector<8x1xf32>
    %12 = vector.broadcast %11 : vector<8x1xf32> to vector<8x8xf32>
    %13 = arith.subf %9, %12 : vector<8x8xf32>
    %14 = math.exp %13 : vector<8x8xf32>
    %cst_6 = arith.constant dense<0.000000e+00> : vector<8xf32>
    %15 = vector.multi_reduction <add>, %14, %cst_6 [1] : vector<8x8xf32> to vector<8xf32>
    %16 = vector.shape_cast %15 : vector<8xf32> to vector<8x1xf32>
    %17 = arith.truncf %14 : vector<8x8xf32> to vector<8x8xbf16>
    %18 = arith.truncf %6 : vector<8x8xf32> to vector<8x8xbf16>
    %cst_7 = arith.constant dense<0.000000e+00> : vector<8x8xf32>
    %19 = tpu.matmul %17, %18, %cst_7 {dimension_numbers = #tpu.dot_dimension_numbers<[1], [0], [0], [1], [0, 0, 1, 1], [], []>} : vector<8x8xbf16>, vector<8x8xbf16>, vector<8x8xf32> -> vector<8x8xf32>
    %20 = tpu.reciprocal %16 {approx = true} : vector<8x1xf32> -> vector<8x1xf32>
    %21 = vector.broadcast %20 : vector<8x1xf32> to vector<8x8xf32>
    %22 = arith.mulf %19, %21 : vector<8x8xf32>
    %23 = vector.extract_strided_slice %3 {offsets = [0, 8], sizes = [8, 8], strides = [1, 1]} : vector<8x96xf32> to vector<8x8xf32>
    %24 = vector.extract_strided_slice %3 {offsets = [0, 40], sizes = [8, 8], strides = [1, 1]} : vector<8x96xf32> to vector<8x8xf32>
    %25 = vector.extract_strided_slice %3 {offsets = [0, 72], sizes = [8, 8], strides = [1, 1]} : vector<8x96xf32> to vector<8x8xf32>
    %26 = arith.truncf %23 : vector<8x8xf32> to vector<8x8xbf16>
    %27 = arith.truncf %24 : vector<8x8xf32> to vector<8x8xbf16>
    %cst_8 = arith.constant dense<0.000000e+00> : vector<8x8xf32>
    %28 = tpu.matmul %26, %27, %cst_8 {dimension_numbers = #tpu.dot_dimension_numbers<[1], [1], [0], [0], [0, 0, 1, 0], [], []>} : vector<8x8xbf16>, vector<8x8xbf16>, vector<8x8xf32> -> vector<8x8xf32>
    %cst_9 = arith.constant dense<0xFF800000> : vector<8xf32>
    %29 = vector.multi_reduction <maximumf>, %28, %cst_9 [1] : vector<8x8xf32> to vector<8xf32>
    %30 = vector.shape_cast %29 : vector<8xf32> to vector<8x1xf32>
    %31 = vector.broadcast %30 : vector<8x1xf32> to vector<8x8xf32>
    %32 = arith.subf %28, %31 : vector<8x8xf32>
    %33 = math.exp %32 : vector<8x8xf32>
    %cst_10 = arith.constant dense<0.000000e+00> : vector<8xf32>
    %34 = vector.multi_reduction <add>, %33, %cst_10 [1] : vector<8x8xf32> to vector<8xf32>
    %35 = vector.shape_cast %34 : vector<8xf32> to vector<8x1xf32>
    %36 = arith.truncf %33 : vector<8x8xf32> to vector<8x8xbf16>
    %37 = arith.truncf %25 : vector<8x8xf32> to vector<8x8xbf16>
    %cst_11 = arith.constant dense<0.000000e+00> : vector<8x8xf32>
    %38 = tpu.matmul %36, %37, %cst_11 {dimension_numbers = #tpu.dot_dimension_numbers<[1], [0], [0], [1], [0, 0, 1, 1], [], []>} : vector<8x8xbf16>, vector<8x8xbf16>, vector<8x8xf32> -> vector<8x8xf32>
    %39 = tpu.reciprocal %35 {approx = true} : vector<8x1xf32> -> vector<8x1xf32>
    %40 = vector.broadcast %39 : vector<8x1xf32> to vector<8x8xf32>
    %41 = arith.mulf %38, %40 : vector<8x8xf32>
    %42 = vector.extract_strided_slice %3 {offsets = [0, 16], sizes = [8, 8], strides = [1, 1]} : vector<8x96xf32> to vector<8x8xf32>
    %43 = vector.extract_strided_slice %3 {offsets = [0, 48], sizes = [8, 8], strides = [1, 1]} : vector<8x96xf32> to vector<8x8xf32>
    %44 = vector.extract_strided_slice %3 {offsets = [0, 80], sizes = [8, 8], strides = [1, 1]} : vector<8x96xf32> to vector<8x8xf32>
    %45 = arith.truncf %42 : vector<8x8xf32> to vector<8x8xbf16>
    %46 = arith.truncf %43 : vector<8x8xf32> to vector<8x8xbf16>
    %cst_12 = arith.constant dense<0.000000e+00> : vector<8x8xf32>
    %47 = tpu.matmul %45, %46, %cst_12 {dimension_numbers = #tpu.dot_dimension_numbers<[1], [1], [0], [0], [0, 0, 1, 0], [], []>} : vector<8x8xbf16>, vector<8x8xbf16>, vector<8x8xf32> -> vector<8x8xf32>
    %cst_13 = arith.constant dense<0xFF800000> : vector<8xf32>
    %48 = vector.multi_reduction <maximumf>, %47, %cst_13 [1] : vector<8x8xf32> to vector<8xf32>
    %49 = vector.shape_cast %48 : vector<8xf32> to vector<8x1xf32>
    %50 = vector.broadcast %49 : vector<8x1xf32> to vector<8x8xf32>
    %51 = arith.subf %47, %50 : vector<8x8xf32>
    %52 = math.exp %51 : vector<8x8xf32>
    %cst_14 = arith.constant dense<0.000000e+00> : vector<8xf32>
    %53 = vector.multi_reduction <add>, %52, %cst_14 [1] : vector<8x8xf32> to vector<8xf32>
    %54 = vector.shape_cast %53 : vector<8xf32> to vector<8x1xf32>
    %55 = arith.truncf %52 : vector<8x8xf32> to vector<8x8xbf16>
    %56 = arith.truncf %44 : vector<8x8xf32> to vector<8x8xbf16>
    %cst_15 = arith.constant dense<0.000000e+00> : vector<8x8xf32>
    %57 = tpu.matmul %55, %56, %cst_15 {dimension_numbers = #tpu.dot_dimension_numbers<[1], [0], [0], [1], [0, 0, 1, 1], [], []>} : vector<8x8xbf16>, vector<8x8xbf16>, vector<8x8xf32> -> vector<8x8xf32>
    %58 = tpu.reciprocal %54 {approx = true} : vector<8x1xf32> -> vector<8x1xf32>
    %59 = vector.broadcast %58 : vector<8x1xf32> to vector<8x8xf32>
    %60 = arith.mulf %57, %59 : vector<8x8xf32>
    %61 = vector.extract_strided_slice %3 {offsets = [0, 24], sizes = [8, 8], strides = [1, 1]} : vector<8x96xf32> to vector<8x8xf32>
    %62 = vector.extract_strided_slice %3 {offsets = [0, 56], sizes = [8, 8], strides = [1, 1]} : vector<8x96xf32> to vector<8x8xf32>
    %63 = vector.extract_strided_slice %3 {offsets = [0, 88], sizes = [8, 8], strides = [1, 1]} : vector<8x96xf32> to vector<8x8xf32>
    %64 = arith.truncf %61 : vector<8x8xf32> to vector<8x8xbf16>
    %65 = arith.truncf %62 : vector<8x8xf32> to vector<8x8xbf16>
    %cst_16 = arith.constant dense<0.000000e+00> : vector<8x8xf32>
    %66 = tpu.matmul %64, %65, %cst_16 {dimension_numbers = #tpu.dot_dimension_numbers<[1], [1], [0], [0], [0, 0, 1, 0], [], []>} : vector<8x8xbf16>, vector<8x8xbf16>, vector<8x8xf32> -> vector<8x8xf32>
    %cst_17 = arith.constant dense<0xFF800000> : vector<8xf32>
    %67 = vector.multi_reduction <maximumf>, %66, %cst_17 [1] : vector<8x8xf32> to vector<8xf32>
    %68 = vector.shape_cast %67 : vector<8xf32> to vector<8x1xf32>
    %69 = vector.broadcast %68 : vector<8x1xf32> to vector<8x8xf32>
    %70 = arith.subf %66, %69 : vector<8x8xf32>
    %71 = math.exp %70 : vector<8x8xf32>
    %cst_18 = arith.constant dense<0.000000e+00> : vector<8xf32>
    %72 = vector.multi_reduction <add>, %71, %cst_18 [1] : vector<8x8xf32> to vector<8xf32>
    %73 = vector.shape_cast %72 : vector<8xf32> to vector<8x1xf32>
    %74 = arith.truncf %71 : vector<8x8xf32> to vector<8x8xbf16>
    %75 = arith.truncf %63 : vector<8x8xf32> to vector<8x8xbf16>
    %cst_19 = arith.constant dense<0.000000e+00> : vector<8x8xf32>
    %76 = tpu.matmul %74, %75, %cst_19 {dimension_numbers = #tpu.dot_dimension_numbers<[1], [0], [0], [1], [0, 0, 1, 1], [], []>} : vector<8x8xbf16>, vector<8x8xbf16>, vector<8x8xf32> -> vector<8x8xf32>
    %77 = tpu.reciprocal %73 {approx = true} : vector<8x1xf32> -> vector<8x1xf32>
    %78 = vector.broadcast %77 : vector<8x1xf32> to vector<8x8xf32>
    %79 = arith.mulf %76, %78 : vector<8x8xf32>
    %80 = tpu.concatenate %22, %41, %60, %79 in 1 : vector<8x8xf32>, vector<8x8xf32>, vector<8x8xf32>, vector<8x8xf32> -> vector<8x32xf32>
    %81 = arith.truncf %80 : vector<8x32xf32> to vector<8x32xbf16>
    %c0_20 = arith.constant 0 : index
    %c0_21 = arith.constant 0 : index
    %82 = vector.load %arg3[%c0_20, %c0_21] : memref<32x32xbf16, #tpu.memory_space<vmem>>, vector<32x32xbf16>
    %cst_22 = arith.constant dense<0.000000e+00> : vector<8x32xf32>
    %83 = tpu.matmul %81, %82, %cst_22 {dimension_numbers = #tpu.dot_dimension_numbers<[1], [0], [0], [1], [0, 0, 1, 1], [], []>} : vector<8x32xbf16>, vector<32x32xbf16>, vector<8x32xf32> -> vector<8x32xf32>
    %c0_23 = arith.constant 0 : index
    %c0_24 = arith.constant 0 : index
    %84 = vector.load %arg4[%c0_23, %c0_24] : memref<1x32xf32, #tpu.memory_space<vmem>>, vector<1x32xf32>
    %85 = vector.broadcast %84 : vector<1x32xf32> to vector<8x32xf32>
    %86 = arith.addf %83, %85 : vector<8x32xf32>
    %87 = vector.shape_cast %86 : vector<8x32xf32> to vector<1x8x32xf32>
    %c0_25 = arith.constant 0 : index
    %c0_26 = arith.constant 0 : index
    %c0_27 = arith.constant 0 : index
    %88 = vector.load %arg5[%c0_25, %c0_26, %c0_27] : memref<1x8x32xf32, #tpu.memory_space<vmem>>, vector<1x8x32xf32>
    tpu.vector_store %arg5[%c0_25, %c0_26, %c0_27], %87 {strides = array<i32>} : memref<1x8x32xf32, #tpu.memory_space<vmem>>, vector<1x8x32xf32>,
    return
  }
  func.func @transform_0(%arg0: i32) -> (i32, i32, i32) {
    %c0_i32 = arith.constant 0 : i32
    %c0_i32_0 = arith.constant 0 : i32
    %c0_i32_1 = arith.constant 0 : i32
    return %arg0, %c0_i32, %c0_i32_0 : i32, i32, i32
  }
  func.func @transform_1(%arg0: i32) -> (i32, i32) {
    %c0_i32 = arith.constant 0 : i32
    %c0_i32_0 = arith.constant 0 : i32
    %c0_i32_1 = arith.constant 0 : i32
    return %c0_i32, %c0_i32_0 : i32, i32
  }
  func.func @transform_2(%arg0: i32) -> (i32, i32) {
    %c0_i32 = arith.constant 0 : i32
    %c0_i32_0 = arith.constant 0 : i32
    %c0_i32_1 = arith.constant 0 : i32
    return %c0_i32, %c0_i32_0 : i32, i32
  }
  func.func @transform_3(%arg0: i32) -> (i32, i32) {
    %c0_i32 = arith.constant 0 : i32
    %c0_i32_0 = arith.constant 0 : i32
    %c0_i32_1 = arith.constant 0 : i32
    return %c0_i32, %c0_i32_0 : i32, i32
  }
  func.func @transform_4(%arg0: i32) -> (i32, i32, i32) {
    %c0_i32 = arith.constant 0 : i32
    %c0_i32_0 = arith.constant 0 : i32
    %c0_i32_1 = arith.constant 0 : i32
    return %arg0, %c0_i32, %c0_i32_0 : i32, i32, i32
  }
}

</mosaic_0001>

<bundles_post_ra>
// kernel: tpu_custom_call.1
= control target key start
LH: loop header
LB: loop body
LE: loop exit
PB: predicated region body
PF: predicated region fallthrough
CT: control target
= control target key end

     0   :  { %9 = vsyncpa [#allocation3], 0  ;;  %s1668_s0 = inlined_call_operand.hbm [shape: bf16[2,8,32], index: 0, kind: input, shape index: {}]   ;;  %s1669_s1 = inlined_call_operand.hbm [shape: bf16[32,96], index: 1, kind: input, shape index: {}]   ;;  %s1670_s2 = inlined_call_operand.hbm [shape: bf16[32,32], index: 2, kind: input, shape index: {}]   ;;  %s1671_s3 = inlined_call_operand.vmem [shape: f32[1,32], index: 3, kind: input, shape index: {}]   ;;  %s1672_s4 = inlined_call_operand.hbm [shape: f32[2,8,32], index: 4, kind: output, shape index: {}]  }
   0x1   :  { %11 = vsyncpa [#allocation3 + $0x1], 0 }
   0x2   :  { %12 = vsyncpa [#allocation6], 0 }
   0x3   :  { %13 = vsyncpa [#allocation4], 0 }
   0x4   :  { %15 = vsyncpa [#allocation4 + $0x1], 0  ;;  %s1361_s15 = smov 0   ;;  %s1363_s16 = smov 0  }
   0x5   :  { %s1365_s17 = smov 0   ;;  %s1367_s18 = smov 0  }
   0x6 LB: > { %s1382_s19 = sadd.s32 4294967295, %s1312_s18   ;;  %s934_s20 = sadd.s32 4294967294, %s1312_s18   ;;  %s1312_s18 = sphi %s1367_s18, %s1692_s18   ;;  %s1308_s17 = sphi %s1365_s17, %s1691_s17   ;;  %s1304_s16 = sphi %s1363_s16, %s1690_s16   ;;  %s1300_s15 = sphi %s1361_s15, %s1689_s15  }
   0x7   : > { %p41_p0 = scmp.ne.s32.totalorder %s1304_s16, %s1300_s15  ;;  %p1673_p1 = scmp.eq.s32.totalorder %s1382_s19, 0 }
   0x8   : > { %p134_p3 = scmp.eq.s32.totalorder %s934_s20, 1  ;;  %p935_p5 = scmp.ge.s32.totalorder %s1312_s18, 1 }
   0x9   : > { %p1391_p4 = por %p1673_p1, %p41_p0  ;;  %p141_p7 = scmp.lt.s32.totalorder %s1312_s18, 3 }
   0xa   : > { %p1396_p6 = por %p134_p3, %p41_p0  ;;  %s1314_s24 = smov [#allocation5]  }
   0xb   : > { %s1676_s21 = scalar_select %p1391_p4, 1, 0 }
   0xc   : > { %s1677_s22 = scalar_select %p1396_p6, 1, 0 }
   0xd   : > { %p1401_p8 = pnand %p935_p5, %p141_p7  ;;  %s153_s25 = sshll.u32 %s1314_s24, 4  ;;  %s1405_s25 = int_to_ptr.vmem [resolvable:$true] %s153_s25 }
   0xe   : > { %s1315_s27 = smov [#allocation7]   ;;  %s1156_s5 = scalar_lea.hbm %s1669_s1, 256 }
   0xf   : > { %p1063_p9 = pneg %p1401_p8  ;;  %s166_s28 = sshll.u32 %s1315_s27, 4  ;;  %s1416_s28 = int_to_ptr.vmem [resolvable:$true] %s166_s28 }
  0x10   : > { %p1157_p12 = scmp.ne.s32.totalorder %s1669_s1, %s1156_s5  ;;  %p1163_p5 = scmp.lt.u32.totalorder %s1156_s5, %s1669_s1 }
  0x11   : > { %p1412_p11 = pnand %p1063_p9, %p1673_p1 }
  0x13   : > { %p1158_p13 = pneg %p1412_p11 }
  0x15   : > { %p1159_p0 = pnand %p1158_p13, %p1157_p12 }
  0x17   : > { %p1160_p3 = pneg %p1159_p0 }
  0x19   : > { %p1165_p7 = pnand %p1163_p5, %p1160_p3 }
  0x1b   : > { %1168 = shalt.err (!%p1165_p7)
}
  0x1c   : > { %s1169_s10 = scalar_lea.vmem %s1405_s25, 256  ;;  %p1177_p2 = scmp.lt.s32.totalorder %s1405_s25, %s1405_s25 }
  0x1d   : > { %p1170_p9 = scmp.ne.s32.totalorder %s1405_s25, %s1169_s10  ;;  %p1178_p12 = scmp.lt.s32.totalorder %s1169_s10, %s1169_s10 }
  0x1f   : > { %p1172_p10 = pnand %p1170_p9, %p1158_p13  ;;  %p1179_p0 = por %p1178_p12, %p1177_p2 }
  0x21   : > { %p1173_p1 = pneg %p1172_p10 }
  0x23   : > { %p1180_p6 = pnand %p1179_p0, %p1173_p1 }
  0x25   : > { %1183 = shalt.err (!%p1180_p6)
}
  0x26   : > { %s1316_s11 = smov 64   ;;  %s1317_s12 = smov 4  }
  0x27   : > { %1066 = dma.hbm_to_vmem [thread:$0]  (!%p1412_p11), %s1669_s1, 256, %s1405_s25, [#allocation6], %s1316_s11, %s1316_s11, %s1317_s12  }
  0x28   : > { %s1184_s27 = scalar_lea.hbm %s1670_s2, 256 }
  0x29   : > { %p1185_p2 = scmp.ne.s32.totalorder %s1670_s2, %s1184_s27  ;;  %p1191_p10 = scmp.lt.u32.totalorder %s1184_s27, %s1670_s2 }
  0x2b   : > { %p1187_p1 = pnand %p1185_p2, %p1158_p13 }
  0x2d   : > { %p1188_p6 = pneg %p1187_p1 }
  0x2f   : > { %p1193_p3 = pnand %p1191_p10, %p1188_p6 }
  0x31   : > { %1196 = shalt.err (!%p1193_p3)
}
  0x32   : > { %s1197_s25 = scalar_lea.vmem %s1416_s28, 256  ;;  %p1205_p12 = scmp.lt.s32.totalorder %s1416_s28, %s1416_s28 }
  0x33   : > { %p1198_p5 = scmp.ne.s32.totalorder %s1416_s28, %s1197_s25  ;;  %p1206_p0 = scmp.lt.s32.totalorder %s1197_s25, %s1197_s25 }
  0x35   : > { %p1200_p7 = pnand %p1198_p5, %p1158_p13  ;;  %p1207_p2 = por %p1206_p0, %p1205_p12 }
  0x37   : > { %p1201_p9 = pneg %p1200_p7 }
  0x39   : > { %p1208_p1 = pnand %p1207_p2, %p1201_p9 }
  0x3b   : > { %1211 = shalt.err (!%p1208_p1)
}
  0x3c   : > { %1069 = dma.hbm_to_vmem [thread:$0]  (!%p1412_p11), %s1670_s2, 256, %s1416_s28, [#allocation6], %s1316_s11, %s1316_s11, %s1317_s12  }
  0x3d   : > { %s1471_s9 = sadd.s32 1, %s1312_s18   ;;  %s28_s26 = sadd.s32 1, %s1308_s17 }
  0x3e   : > { %s25_s10 = ssub.s32 %s1312_s18, %s1471_s9  ;;  %p35_p13 = scmp.ne.s32.totalorder %s1308_s17, %s1304_s16 }
  0x3f   : > { %p26_p6 = scmp.eq.s32.totalorder %s25_s10, 0  ;;  %p36_p10 = scmp.eq.s32.totalorder %s1312_s18, 0 }
  0x40   : > { %p1680_p3 = scmp.eq.s32.totalorder %s1382_s19, 1  ;;  %p1080_p7 = scmp.lt.s32.totalorder %s1312_s18, 2 }
  0x41   : > { %s1487_s14 = scalar_select %p26_p6, %s1308_s17, %s28_s26  }
  0x42   : > { %p1481_p5 = por %p1680_p3, %p35_p13  ;;  %p37_p9 = por %p36_p10, %p35_p13 }
  0x43   : > { %s183_s20 = sand.u32 1, %s1308_s17   ;;  %s940_s28 = sshll.u32 %s1312_s18, 6 }
  0x44   : > { %s1681_s13 = scalar_select %p1481_p5, 1, 0 }
  0x45   : > { %s939_s24 = sshll.u32 %s183_s20, 2  ;;  %s1494_s27 = scalar_lea.hbm %s1668_s0, %s940_s28 }
  0x46   : > { %s187_s29 = scalar_lea.vmem [#allocation2], %s939_s24  ;;  %p1498_p11 = pnand %p1080_p7, %p37_p9 }
  0x47   : > { %s194_s30 = sshll.u32 %s187_s29, 4  ;;  %s184_s6 = scalar_lea.sflag [#allocation3], %s183_s20  ;;  %s1496_s30 = int_to_ptr.vmem [resolvable:$true] %s194_s30 }
  0x48   : > { %s1212_s25 = scalar_lea.hbm %s1494_s27, 64  ;;  %p1214_p0 = pneg %p1498_p11 }
  0x49   : > { %p1213_p12 = scmp.ne.s32.totalorder %s1494_s27, %s1212_s25  ;;  %s1217_s26 = scalar_lea.hbm %s1668_s0, 128 }
  0x4a   : > { %p1218_p13 = scmp.lt.u32.totalorder %s1494_s27, %s1668_s0  ;;  %p1219_p6 = scmp.lt.u32.totalorder %s1217_s26, %s1212_s25 }
  0x4b   : > { %p1215_p2 = pnand %p1214_p0, %p1213_p12  ;;  %p1221_p3 = scmp.lt.u32.totalorder %s1212_s25, %s1494_s27 }
  0x4c   : > { %p1220_p10 = por %p1219_p6, %p1218_p13 }
  0x4d   : > { %p1216_p1 = pneg %p1215_p2 }
  0x4e   : > { %p1222_p7 = por %p1221_p3, %p1220_p10 }
  0x50   : > { %p1223_p9 = pnand %p1222_p7, %p1216_p1 }
  0x52   : > { %1226 = shalt.err (!%p1223_p9)
}
  0x53   : > { %s1227_s20 = scalar_lea.vmem %s1496_s30, 64  ;;  %s1318_s28 = smov [#allocation2]  }
  0x54   : > { %p1228_p12 = scmp.ne.s32.totalorder %s1496_s30, %s1227_s20  ;;  %s1232_s11 = sshll.u32 %s1318_s28, 4  ;;  %s1233_s11 = int_to_ptr.vmem [resolvable:$false] %s1232_s11 }
  0x55   : > { %s1234_s12 = scalar_lea.vmem %s1233_s11, 128  ;;  %p1235_p4 = scmp.lt.s32.totalorder %s1496_s30, %s1233_s11 }
  0x56   : > { %p1230_p2 = pnand %p1228_p12, %p1214_p0  ;;  %p1236_p13 = scmp.lt.s32.totalorder %s1234_s12, %s1227_s20 }
  0x58   : > { %p1231_p5 = pneg %p1230_p2  ;;  %p1237_p6 = por %p1236_p13, %p1235_p4 }
  0x5a   : > { %p1238_p10 = pnand %p1237_p6, %p1231_p5 }
  0x5c   : > { %1241 = shalt.err (!%p1238_p10)
}
  0x5d   : > { %1073 = dma.hbm_to_vmem [thread:$0]  (!%p1498_p11), %s1494_s27, 64, %s1496_s30, %s184_s6  }
  0x5e   : > { %203 = sbr.rel (%p1401_p8) target bundleno = 1437 (0x59d), region = 36  ;;  %s1530_s29 = sand.u32 (!%p1401_p8), 1, %s1304_s16  }
  0x5f   : > { %s942_s25 = sshll.u32 (!%p1401_p8), %s1530_s29, 2  ;;  %s206_s7 = scalar_lea.sflag (!%p1401_p8), [#allocation3], %s1530_s29 }
  0x60   : > { %s209_s8 = scalar_lea.vmem (!%p1401_p8), [#allocation2], %s942_s25  ;;  %p1683_p4 = scmp.ne.s32.totalorder (!%p1401_p8), %s1676_s21, 0 }
  0x65   : > { %1287 = dma.done.wait (%p1683_p4), %s206_s7, 64  }
  0x66   : > { %1289 = vsyncadd (%p1683_p4), %s206_s7, 4294967232  ;;  %p1684_p5 = scmp.eq.s32.totalorder %s1382_s19, 0 }
  0x68   : > { %1291 = dma.done.wait (%p1684_p5), [#allocation6], 512   ;;  %p1685_p11 = pmov %p1684_p5 }
  0x69   : > { %v1319_v0 = vmov 0.0   ;;  %vm1320_vm0 = vmmov 0   ;;  %v1136_v1 = vld [vmem:[#allocation5] sm:$0xff]   ;;  %v1137_v2 = vld [vmem:[#allocation5 + $0x8] sm:$0xff]   ;;  %v243_v3 = vld [vmem:[%s209_s8] sm:$0xf] }
  0x6a   : > { %1293 = vsyncadd (%p1685_p11), [#allocation6], 4294966784  ;;  %987 = vmatprep.subr.bf16.mxu0 %v1319_v0  ;;  %991 = vmatprep.mubr.msk.bf16.mxu0 %vm1320_vm0, %v1319_v0  ;;  %vm260_vm1 = vcmask 261120   ;;  %s1321_s21 = smov 120   ;;  %s1322_s23 = smov 96   ;;  %vm308_vm2 = vcmask 64512  }
  0x6b   : > { %995 = vmatprep.subr.bf16.mxu1 %v1319_v0  ;;  %997 = vmatprep.mubr.msk.bf16.mxu1 %vm1320_vm0, %v1319_v0  ;;  %s1323_s27 = smov 80   ;;  %s1324_s30 = smov 88   ;;  %vm370_vm3 = vcmask 1043456   ;;  %vm759_vm4 = vcmask 130048   ;;  %vm761_vm5 = vcmask 195584  }
  0x6c   : > { %988 = vmatpush3.bf16.msra.mxu0 %v1136_v1  ;;  %s1325_s5 = smov 72   ;;  %s1326_s6 = smov 112  }
  0x6d   : > { %989 = vmatprep.subr.bf16.mxu0 %v1319_v0  ;;  %s1327_s26 = smov 104   ;;  %s1328_s10 = smov 56  }
  0x6e   : > { %s1329_s24 = smov 64   ;;  %s1330_s20 = smov 40  }
  0x6f   : > { %s1331_s28 = smov 48   ;;  %s1332_s11 = smov 8  }
  0x70   : > { %990 = vmatpush3.bf16.msra.mxu0 %v1137_v2  ;;  %s1333_s12 = smov 16   ;;  %s1334_s25 = smov 24  }
  0x71   : > { %1001 = vmatprep.subr.bf16.mxu0 %v1319_v0  ;;  %s945_s7 = sshll.u32 %s1530_s29, 3  ;;  %p1686_p0 = scmp.ne.s32.totalorder %s1681_s13, 0 }
  0x73   : > { %992 = vmatmul.mubr.msk.bf16.vlgmr.msra.gmra.mrb[0].mxu0 %vm260_vm1, %v243_v3 }
  0x74   : > { %1003 = vmatprep.mubr.msk.bf16.mxu0 %vm1320_vm0, %v1319_v0 }
 0x146   : > { %v298_v4 = vpop.f32.mrb[0].mxu0 }
 0x147   : > { %v1553_v5 = vpack.c.bf16 %v298_v4, %v298_v4  ;;  %v993_v6 = vpop.f32.mrb[1].mxu0 }
 0x148   : > { %v301_v7 = vpop.f32.mrb[2].mxu0 }
 0x149   : > { %416 = vrot.lane.b32.xlu1 %v1553_v5, %s1321_s21  ;;  %306 = vrot.lane.b32.xlu0 %v1553_v5, %s1322_s23  ;;  %v994_v8 = vpop.f32.mrb[3].mxu0  ;;  %s962_s23 = sshll.u32 %s1382_s19, 7  ;;  %s832_s19 = scalar_lea.sflag [#allocation4], %s1530_s29 }
 0x14d   : > { %528 = vrot.lane.b32.xlu1 %v1553_v5, %s1323_s27  ;;  %418 = vrot.lane.b32.xlu0 %v1553_v5, %s1324_s30  ;;  %s241_s27 = scalar_lea.vmem [#allocation8], %s945_s7 }
 0x14e   : > { %s845_s30 = sshll.u32 %s241_s27, 4  ;;  %s1625_s30 = int_to_ptr.vmem [resolvable:$true] %s845_s30 }
 0x151   : > { %638 = vrot.lane.b32.xlu1 %v1553_v5, %s1325_s5  ;;  %526 = vrot.lane.b32.xlu0 %v1553_v5, %s1326_s6 }
 0x155   : > { %636 = vrot.lane.b32.xlu0 %v1553_v5, %s1327_s26  ;;  %s1623_s26 = scalar_lea.hbm %s1672_s4, %s962_s23 }
 0x1bb   : > { %v307_v9 = vpop.permute.xlu0 %306  ;;  %v417_v12 = vpop.permute.xlu1 %416 }
 0x1bc   : > { %v313_v10 = vsel %vm308_vm2, %v307_v9, 0 }
 0x1bd   : > { %996 = vmatpush3.bf16.xpose.msra.mxu1 %v313_v10 }
 0x1be   : > { %1007 = vmatprep.subr.bf16.mxu1 %v1319_v0 }
 0x1bf   : > { %v419_v11 = vpop.permute.xlu0 %418  ;;  %v529_v14 = vpop.permute.xlu1 %528 }
 0x1c0   : > { %v424_v13 = vsel %vm308_vm2, %v419_v11, 0  ;;  %v534_v15 = vsel %vm308_vm2, %v529_v14, 0 }
 0x1c3   : > { %v639_v16 = vpop.permute.xlu1 %638  ;;  %v527_v17 = vpop.permute.xlu0 %526 }
 0x1c4   : > { %998 = vmatmul.mubr.msk.bf16.vlgmr.msra.gmra.mrb[0].mxu1 %vm308_vm2, %v1553_v5  ;;  %v644_v18 = vsel %vm308_vm2, %v639_v16, 0 }
 0x1c5   : > { %1008 = vmatpush3.bf16.xpose.msra.mxu1 %v424_v13  ;;  %1009 = vmatprep.mubr.msk.bf16.mxu1 %vm1320_vm0, %v1319_v0 }
 0x1c6   : > { %1019 = vmatprep.subr.bf16.mxu1 %v1319_v0 }
 0x1c7   : > { %v637_v19 = vpop.permute.xlu0 %636 }
 0x1cc   : > { %1010 = vmatmul.mubr.msk.bf16.vlgmr.msra.gmra.mrb[4].mxu1 %vm308_vm2, %v417_v12 }
 0x1cd   : > { %1020 = vmatpush3.bf16.xpose.msra.mxu1 %v534_v15  ;;  %1021 = vmatprep.mubr.msk.bf16.mxu1 %vm1320_vm0, %v1319_v0 }
 0x1ce   : > { %1031 = vmatprep.subr.bf16.mxu1 %v1319_v0 }
 0x1d4   : > { %1022 = vmatmul.mubr.msk.bf16.vlgmr.msra.gmra.mrb[8].mxu1 %vm308_vm2, %v527_v17 }
 0x1d5   : > { %1032 = vmatpush3.bf16.xpose.msra.mxu1 %v644_v18  ;;  %1033 = vmatprep.mubr.msk.bf16.mxu1 %vm1320_vm0, %v1319_v0 }
 0x1d6   : > { %1043 = vmatprep.subr.bf16.mxu1 %v1319_v0 }
 0x1dc   : > { %1034 = vmatmul.mubr.msk.bf16.vlgmr.msra.gmra.mrb[12].mxu1 %vm308_vm2, %v637_v19 }
 0x1dd   : > { %1047 = vmatprep.mubr.msk.bf16.mxu1 %vm1320_vm0, %v1319_v0 }
 0x297   : > { %v349_v20 = vpop.f32.mrb[0].mxu1 }
 0x298   : > { %v999_v21 = vpop.f32.mrb[1].mxu1  ;;  %v355_v22 = vsel %vm308_vm2, %v349_v20, -inf }
 0x299   : > { %356 = vmax.xlane.f32.xlu1 %v355_v22  ;;  %v352_v23 = vpop.f32.mrb[2].mxu1  ;;  %v1138_v21 = vld [vmem:[#allocation7] sm:$0xff]  }
 0x29a   : > { %v1000_v24 = vpop.f32.mrb[3].mxu1  ;;  %1044 = vmatpush3.bf16.msra.mxu1 %v1138_v21  ;;  %v1139_v23 = vld [vmem:[#allocation7 + $0x8] sm:$0xff]  }
 0x29b   : > { %1045 = vmatprep.subr.bf16.mxu1 %v1319_v0 }
 0x29e   : > { %1046 = vmatpush3.bf16.msra.mxu1 %v1139_v23 }
 0x29f   : > { %v460_v25 = vpop.f32.mrb[4].mxu1 }
 0x2a0   : > { %v1011_v26 = vpop.f32.mrb[5].mxu1  ;;  %v466_v27 = vsel %vm308_vm2, %v460_v25, -inf }
 0x2a1   : > { %467 = vmax.xlane.f32.xlu0 %v466_v27  ;;  %v463_v28 = vpop.f32.mrb[6].mxu1 }
 0x2a2   : > { %v1012_v29 = vpop.f32.mrb[7].mxu1 }
 0x2a7   : > { %v570_v30 = vpop.f32.mrb[8].mxu1 }
 0x2a8   : > { %v1023_v31 = vpop.f32.mrb[9].mxu1  ;;  %v576_v32 = vsel %vm308_vm2, %v570_v30, -inf }
 0x2a9   : > { %577 = vmax.xlane.f32.xlu0 %v576_v32  ;;  %v573_v33 = vpop.f32.mrb[10].mxu1 }
 0x2aa   : > { %476 = vrot.lane.b32.xlu1 %v1553_v5, %s1328_s10  ;;  %v1024_v34 = vpop.f32.mrb[11].mxu1  ;;  %s1242_s10 = scalar_lea.vmem %s1625_s30, 128 }
 0x2ab   : > { %p1243_p8 = scmp.ne.s32.totalorder %s1625_s30, %s1242_s10 }
 0x2ad   : > { %p1244_p1 = pnand %p1243_p8, %p1686_p0 }
 0x2af   : > { %v680_v35 = vpop.f32.mrb[12].mxu1  ;;  %p1245_p3 = pneg %p1244_p1 }
 0x2b0   : > { %v1035_v36 = vpop.f32.mrb[13].mxu1  ;;  %v686_v39 = vsel %vm308_vm2, %v680_v35, -inf }
 0x2b1   : > { %v683_v37 = vpop.f32.mrb[14].mxu1 }
 0x2b2   : > { %v1036_v38 = vpop.f32.mrb[15].mxu1 }
 0x2bf   : > { %365 = vrot.lane.b32.xlu0 %v1553_v5, %s1329_s24  ;;  %s1335_s24 = smov [#allocation8]  }
 0x2c3   : > { %696 = vrot.lane.b32.xlu0 %v1553_v5, %s1330_s20  ;;  %s1246_s20 = sshll.u32 %s1335_s24, 4  ;;  %s1247_s20 = int_to_ptr.vmem [resolvable:$false] %s1246_s20 }
 0x2c4   : > { %p1249_p7 = scmp.lt.s32.totalorder %s1625_s30, %s1247_s20 }
 0x2ce   : > { %687 = vmax.xlane.f32.xlu1 %v686_v39 }
 0x2df   : > { %586 = vrot.lane.b32.xlu1 %v1553_v5, %s1331_s28  ;;  %s1248_s28 = scalar_lea.vmem %s1247_s20, 256 }
 0x2e0   : > { %p1250_p9 = scmp.lt.s32.totalorder %s1248_s28, %s1242_s10 }
 0x2e2   : > { %p1251_p12 = por %p1250_p9, %p1249_p7 }
 0x2e4   : > { %p1252_p2 = pnand %p1251_p12, %p1245_p3 }
 0x326   : > { %v357_v40 = vpop.xlane.xlu1 %356 }
 0x327   : > { %v358_v41 = vsub.f32 %v349_v20, %v357_v40 }
 0x329   : > { %v359_v42 = vmul.f32 1.442695, %v358_v41 }
 0x32a   : > { %v477_v52 = vpop.permute.xlu1 %476 }
 0x32b   : > { %1140 = vpow2.f32 %v359_v42  ;;  %v482_v56 = vsel %vm370_vm3, %v477_v52, 0 }
 0x32e   : > { %v468_v43 = vpop.xlane.xlu0 %467 }
 0x32f   : > { %v469_v44 = vsub.f32 %v460_v25, %v468_v43 }
 0x331   : > { %v470_v45 = vmul.f32 1.442695, %v469_v44 }
 0x333   : > { %1142 = vpow2.f32 %v470_v45  ;;  %v957_v45 = vld [vmem:[%s1671_s3] ss:$0 sm:$0xff] }
 0x335   : > { %v1141_v49 = vpop.eup %1140 }
 0x336   : > { %v578_v46 = vpop.xlane.xlu0 %577  ;;  %v364_v54 = vpack.c.bf16 %v1141_v49, %v1141_v49  ;;  %v361_v57 = vsel %vm308_vm2, %v1141_v49, 0.0 }
 0x337   : > { %v579_v47 = vsub.f32 %v570_v30, %v578_v46 }
 0x339   : > { %v580_v48 = vmul.f32 1.442695, %v579_v47 }
 0x33a   : > { %v366_v50 = vpop.permute.xlu0 %365 }
 0x33b   : > { %1144 = vpow2.f32 %v580_v48  ;;  %v372_v51 = vsel %vm370_vm3, %v366_v50, 0 }
 0x33c   : > { %1002 = vmatpush3.bf16.msra.mxu0 %v372_v51 }
 0x33d   : > { %v1143_v53 = vpop.eup %1142  ;;  %1013 = vmatprep.subr.bf16.mxu0 %v1319_v0 }
 0x33e   : > { %v472_v55 = vsel %vm308_vm2, %v1143_v53, 0.0  ;;  %v475_v59 = vpack.c.bf16 %v1143_v53, %v1143_v53  ;;  %v697_v3 = vpop.permute.xlu0 %696 }
 0x33f   : > { %473 = vadd.xlane.f32.xlu1 %v472_v55  ;;  %1004 = vmatmul.mubr.msk.bf16.vlgmr.msra.gmra.mrb[4].mxu0 %vm308_vm2, %v364_v54  ;;  %v702_v5 = vsel %vm370_vm3, %v697_v3, 0 }
 0x340   : > { %1014 = vmatpush3.bf16.msra.mxu0 %v482_v56  ;;  %1015 = vmatprep.mubr.msk.bf16.mxu0 %vm1320_vm0, %v1319_v0 }
 0x341   : > { %1025 = vmatprep.subr.bf16.mxu0 %v1319_v0 }
 0x343   : > { %362 = vadd.xlane.f32.xlu1 %v361_v57 }
 0x345   : > { %v1145_v58 = vpop.eup %1144 }
 0x346   : > { %v582_v60 = vsel %vm308_vm2, %v1145_v58, 0.0  ;;  %v585_v4 = vpack.c.bf16 %v1145_v58, %v1145_v58 }
 0x347   : > { %583 = vadd.xlane.f32.xlu0 %v582_v60  ;;  %1016 = vmatmul.mubr.msk.bf16.vlgmr.msra.gmra.mrb[8].mxu0 %vm308_vm2, %v475_v59 }
 0x348   : > { %1027 = vmatprep.mubr.msk.bf16.mxu0 %vm1320_vm0, %v1319_v0 }
 0x35b   : > { %v688_v61 = vpop.xlane.xlu1 %687 }
 0x35c   : > { %v689_v62 = vsub.f32 %v680_v35, %v688_v61 }
 0x35e   : > { %v690_v63 = vmul.f32 1.442695, %v689_v62 }
 0x35f   : > { %v587_v1 = vpop.permute.xlu1 %586 }
 0x360   : > { %1146 = vpow2.f32 %v690_v63  ;;  %v592_v2 = vsel %vm370_vm3, %v587_v1, 0 }
 0x361   : > { %1026 = vmatpush3.bf16.msra.mxu0 %v592_v2 }
 0x362   : > { %1037 = vmatprep.subr.bf16.mxu0 %v1319_v0 }
 0x364   : > { %1028 = vmatmul.mubr.msk.bf16.vlgmr.msra.gmra.mrb[12].mxu0 %vm308_vm2, %v585_v4 }
 0x365   : > { %1038 = vmatpush3.bf16.msra.mxu0 %v702_v5  ;;  %1039 = vmatprep.mubr.msk.bf16.mxu0 %vm1320_vm0, %v1319_v0 }
 0x36a   : > { %v1147_v6 = vpop.eup %1146 }
 0x36b   : > { %v692_v7 = vsel %vm308_vm2, %v1147_v6, 0.0  ;;  %v695_v8 = vpack.c.bf16 %v1147_v6, %v1147_v6 }
 0x36c   : > { %693 = vadd.xlane.f32.xlu0 %v692_v7 }
 0x36d   : > { %1040 = vmatmul.mubr.msk.bf16.vlgmr.msra.gmra.mrb[16].mxu0 %vm308_vm2, %v695_v8 }
 0x3cc   : > { %v474_v9 = vpop.xlane.xlu1 %473 }
 0x3cd   : > { %1148 = vrcp.f32 %v474_v9 }
 0x3d0   : > { %v363_v35 = vpop.xlane.xlu1 %362 }
 0x3d4   : > { %v584_v20 = vpop.xlane.xlu0 %583 }
 0x3d5   : > { %1150 = vrcp.f32 %v584_v20 }
 0x3d7   : > { %v1149_v14 = vpop.eup %1148 }
 0x3df   : > { %v1151_v24 = vpop.eup %1150 }
 0x3f9   : > { %v694_v22 = vpop.xlane.xlu0 %693 }
 0x3fa   : > { %1152 = vrcp.f32 %v694_v22 }
 0x3fb   : > { %1154 = vrcp.f32 %v363_v35 }
 0x404   : > { %v1153_v30 = vpop.eup %1152 }
 0x405   : > { %v1155_v36 = vpop.eup %1154 }
 0x412   : > { %v408_v10 = vpop.f32.mrb[4].mxu0 }
 0x413   : > { %v1005_v11 = vpop.f32.mrb[5].mxu0  ;;  %v415_v39 = vmul.f32 %v1155_v36, %v408_v10 }
 0x414   : > { %v411_v12 = vpop.f32.mrb[6].mxu0 }
 0x415   : > { %v1006_v13 = vpop.f32.mrb[7].mxu0 }
 0x41a   : > { %v518_v15 = vpop.f32.mrb[8].mxu0 }
 0x41b   : > { %v525_v16 = vmul.f32 %v1149_v14, %v518_v15  ;;  %v1017_v17 = vpop.f32.mrb[9].mxu0 }
 0x41c   : > { %v521_v18 = vpop.f32.mrb[10].mxu0 }
 0x41d   : > { %747 = vrot.lane.b32.xlu0 %v525_v16, %s1332_s11  ;;  %v1018_v19 = vpop.f32.mrb[11].mxu0 }
 0x437   : > { %v628_v25 = vpop.f32.mrb[12].mxu0 }
 0x438   : > { %v635_v26 = vmul.f32 %v1151_v24, %v628_v25  ;;  %v1029_v27 = vpop.f32.mrb[13].mxu0 }
 0x439   : > { %v631_v28 = vpop.f32.mrb[14].mxu0 }
 0x43a   : > { %751 = vrot.lane.b32.xlu1 %v635_v26, %s1333_s12  ;;  %v1030_v29 = vpop.f32.mrb[15].mxu0 }
 0x440   : > { %v738_v31 = vpop.f32.mrb[16].mxu0 }
 0x441   : > { %v745_v32 = vmul.f32 %v1153_v30, %v738_v31  ;;  %v1041_v33 = vpop.f32.mrb[17].mxu0 }
 0x442   : > { %v741_v34 = vpop.f32.mrb[18].mxu0 }
 0x443   : > { %755 = vrot.lane.b32.xlu1 %v745_v32, %s1334_s25  ;;  %v1042_v0 = vpop.f32.mrb[19].mxu0 }
 0x48f   : > { %v748_v37 = vpop.permute.xlu0 %747 }
 0x490   : > { %v758_v40 = vsel %vm308_vm2, %v415_v39, %v748_v37 }
 0x4ac   : > { %v752_v38 = vpop.permute.xlu1 %751 }
 0x4ad   : > { %v760_v41 = vsel %vm759_vm4, %v758_v40, %v752_v38 }
 0x4b5   : > { %v756_v42 = vpop.permute.xlu1 %755 }
 0x4b6   : > { %v762_v43 = vsel %vm761_vm5, %v760_v41, %v756_v42 }
 0x4b7   : > { %v763_v44 = vpack.c.bf16 %v762_v43, %v762_v43 }
 0x4b9   : > { %1048 = vmatmul.mubr.msk.bf16.vlgmr.msra.gmra.mrb[16].mxu1 %vm260_vm1, %v763_v44 }
 0x58c   : > { %v824_v46 = vpop.f32.mrb[16].mxu1 }
 0x58d   : > { %v825_v47 = vadd.f32 %v957_v45, %v824_v46  ;;  %v1049_v48 = vpop.f32.mrb[17].mxu1 }
 0x58e   : > { %v827_v49 = vpop.f32.mrb[18].mxu1 }
 0x58f   : > { %v1050_v50 = vpop.f32.mrb[19].mxu1  ;;  %830 = vst.msk [vmem:[%s241_s27] sm:$0xff] %vm260_vm1, %v825_v47 }
 0x590   : > { %1255 = shalt.err (!%p1252_p2)
}
 0x591   : > { %s1256_s29 = scalar_lea.hbm %s1623_s26, 128  ;;  %s1260_s25 = scalar_lea.hbm %s1672_s4, 256 }
 0x592   : > { %p1257_p13 = scmp.ne.s32.totalorder %s1623_s26, %s1256_s29  ;;  %p1261_p4 = scmp.lt.u32.totalorder %s1623_s26, %s1672_s4 }
 0x593   : > { %p1262_p5 = scmp.lt.u32.totalorder %s1260_s25, %s1256_s29  ;;  %p1264_p8 = scmp.lt.u32.totalorder %s1256_s29, %s1623_s26 }
 0x594   : > { %p1258_p6 = pnand %p1257_p13, %p1686_p0 }
 0x595   : > { %p1263_p11 = por %p1262_p5, %p1261_p4 }
 0x596   : > { %p1259_p10 = pneg %p1258_p6 }
 0x597   : > { %p1265_p1 = por %p1264_p8, %p1263_p11 }
 0x599   : > { %p1266_p3 = pnand %p1265_p1, %p1259_p10 }
 0x59b   : > { %1269 = shalt.err (!%p1266_p3)
}
 0x59c   : > { %1061 = dma.vmem_to_hbm [thread:$0]  (%p1686_p0), %s1625_s30, 128, %s1623_s26, %s832_s19  }
 0x59d PF: > { %s857_s21 = sand.u32 1, %s1300_s15   ;;  %p1687_p7 = scmp.ne.s32.totalorder %s1677_s22, 0 }
 0x59e   : > { %p1688_p9 = scmp.ge.s32.totalorder %s1312_s18, 2  ;;  %s858_s23 = scalar_lea.sflag [#allocation4], %s857_s21 }
 0x5a0   : > { %p1075_p12 = pnand %p1688_p9, %p1687_p7 }
 0x5a2   : > { %1295 = dma.done.wait (!%p1075_p12), %s858_s23, 128  }
 0x5a3   : > { %1297 = vsyncadd (!%p1075_p12), %s858_s23, 4294967168  ;;  %p18_p2 = scmp.ge.s32.totalorder %s1471_s9, 4   ;;  %s1689_s15 = smov %s1304_s16 }
 0x5a4   : > { %s1690_s16 = smov %s1308_s17  ;;  %s1691_s17 = smov %s1487_s14 }
 0x5a5   : > { %s1692_s18 = smov %s1471_s9  ;;  %20 = sbr.rel (!%p18_p2) target bundleno = 6 (0x6), region = 89 }
 0x5ac   :  { %863 = vsyncpa [#allocation3], 1 }
 0x5ad   :  { %865 = vsyncpa [#allocation3 + $0x1], 1 }
 0x5ae   :  { %866 = vsyncpa [#allocation6], 1 }
 0x5af   :  { %867 = vsyncpa [#allocation4], 1 }
 0x5b0   :  { %869 = vsyncpa [#allocation4 + $0x1], 1 }

</bundles_post_ra>
